<compile_context>
chip_gen: v7x
topology: tpu7x:2x2x1
jax: 0.10.0
libtpu: 0.0.40
codegen_flags: <defaults>
</compile_context>

<pallas_src>
import jax
import jax.numpy as jnp
from jax.experimental import pallas as pl
from jax.experimental.pallas import tpu as pltpu


def _ensemble_rf_kernel(x_ref, w_ref, theta_ref, o_ref):
    """Single fused ensemble forward for one batch tile.

    x_ref:     (Bt, D)      -- batch tile
    w_ref:     (D,  M*F)    -- all models' random weights, concatenated on F
    theta_ref: (1,  M*F)    -- all models' readout weights, pre-scaled by 1/M
    o_ref:     (Bt, 1)      -- ensemble-mean prediction
    """
    # One wide MXU matmul covering every ensemble member at once.
    feats = jnp.dot(x_ref[...], w_ref[...], preferred_element_type=jnp.float32)
    feats = jnp.maximum(feats, 0.0)  # ReLU activation (per-model, column-wise)

    # Lane-dense readout on VPU/XLU instead of an N=1 MXU matvec.
    # theta already carries the 1/M mean factor, so this IS the ensemble mean.
    o_ref[...] = jnp.sum(feats * theta_ref[...], axis=-1,
                         keepdims=True).astype(o_ref.dtype)


def ensemble_random_feature_forward(x, W, theta, *, block_b=None):
    """x: (B, D) f32; W: (M, D, F) f32; theta: (M, F, 1) f32 -> (B, 1) f32."""
    B, D = x.shape
    M, D2, F = W.shape
    assert D2 == D and theta.shape == (M, F, 1)
    MF = M * F

    # Flatten the ensemble once in the wrapper (per-call constant work):
    #   W_flat[:, m*F + f]      = W[m, :, f]
    #   theta_flat[0, m*F + f]  = theta[m, f, 0] / M   (mean folded in)
    W_flat = jnp.transpose(W, (1, 0, 2)).reshape(D, MF)
    theta_flat = (theta.reshape(1, MF) / jnp.float32(M)).astype(jnp.float32)

    # Batch tiling: one block at small B; a "parallel" grid axis at large B so
    # v7x's two TensorCores both get work.  Tiles must stay multiples of 8.
    if block_b is None:
        block_b = 256 if (B > 256 and B % 256 == 0) else B
    if B % block_b != 0:
        block_b = B
    grid = (B // block_b,)

    return pl.pallas_call(
        _ensemble_rf_kernel,
        out_shape=jax.ShapeDtypeStruct((B, 1), x.dtype),
        grid_spec=pl.GridSpec(
            grid=grid,
            in_specs=[
                # x: one batch tile per grid step
                pl.BlockSpec((block_b, D), lambda b: (b, 0)),
                # W_flat / theta_flat: same full block every step (resident)
                pl.BlockSpec((D, MF), lambda b: (0, 0)),
                pl.BlockSpec((1, MF), lambda b: (0, 0)),
            ],
            out_specs=pl.BlockSpec((block_b, 1), lambda b: (b, 0)),
        ),
        compiler_params=pltpu.CompilerParams(
            # Batch tiles are independent -> shard across TCs where available.
            dimension_semantics=("parallel",),
        ),
    )(x, W_flat, theta_flat)


def _reference_forward(x, W, theta):
    # Pure-JAX reference mirroring the PyTorch ensemble forward.
    preds = []
    for m in range(W.shape[0]):
        feats = jnp.maximum(x @ W[m], 0.0)
        preds.append(feats @ theta[m])
    return jnp.mean(jnp.stack(preds), axis=0)


if __name__ == "__main__":
    # Small deterministic setup consistent with the module:
    # num_models=4, data_dimension=16, num_features_per_model=128, batch=8
    M, D, F, B = 4, 16, 128, 8

    key = jax.random.PRNGKey(0)
    kx, kw, kt = jax.random.split(key, 3)

    x = jax.random.normal(kx, (B, D), dtype=jnp.float32)
    # Random-weight "distribution" draws (frozen at init in the PyTorch model)
    W = jax.random.normal(kw, (M, D, F), dtype=jnp.float32) / jnp.sqrt(D)
    # Deterministic stand-in for learned theta (learn_theta not exercised here)
    theta = jax.random.normal(kt, (M, F, 1), dtype=jnp.float32) / jnp.sqrt(F)

    out = ensemble_random_feature_forward(x, W, theta)
    out = jax.block_until_ready(out)

    ref = _reference_forward(x, W, theta)
    assert out.shape == (B, 1), out.shape
    assert jnp.allclose(out, ref, atol=1e-5, rtol=1e-5), (out, ref)

    print("KERNEL_OK")
</pallas_src>

<mosaic_0001>
module attributes {stable_mosaic.version = 11 : i64} {
  func.func @_ensemble_rf_kernel(%arg0: i32, %arg1: memref<8x16xf32, #tpu.memory_space<vmem>>, %arg2: memref<16x512xf32, #tpu.memory_space<vmem>>, %arg3: memref<1x512xf32, #tpu.memory_space<vmem>>, %arg4: memref<8x1xf32, #tpu.memory_space<vmem>>) attributes {dimension_semantics = [#tpu.dimension_semantics<parallel>], iteration_bounds = array<i64: 1>, scalar_prefetch = 0 : i64, scratch_operands = 0 : i64, tpu.core_type = #tpu.core_type<tc>, window_params = [{transform_indices = @transform_0, window_bounds = array<i64: 8, 16>}, {pipeline_mode = #tpu.pipeline_mode<synchronous>, transform_indices = @transform_1, window_bounds = array<i64: 16, 512>}, {pipeline_mode = #tpu.pipeline_mode<synchronous>, transform_indices = @transform_2, window_bounds = array<i64: 1, 512>}, {transform_indices = @transform_3, window_bounds = array<i64: 8, 1>}]} {
    %c0 = arith.constant 0 : index
    %c0_0 = arith.constant 0 : index
    %0 = vector.load %arg1[%c0, %c0_0] : memref<8x16xf32, #tpu.memory_space<vmem>>, vector<8x16xf32>
    %c0_1 = arith.constant 0 : index
    %c0_2 = arith.constant 0 : index
    %1 = vector.load %arg2[%c0_1, %c0_2] : memref<16x512xf32, #tpu.memory_space<vmem>>, vector<16x512xf32>
    %cst = arith.constant dense<0.000000e+00> : vector<8x512xf32>
    %2 = tpu.matmul %0, %1, %cst {dimension_numbers = #tpu.dot_dimension_numbers<[1], [0], [0], [1], [0, 0, 1, 1], [], []>} : vector<8x16xf32>, vector<16x512xf32>, vector<8x512xf32> -> vector<8x512xf32>
    %cst_3 = arith.constant 0.000000e+00 : f32
    %3 = vector.broadcast %cst_3 : f32 to vector<8x512xf32>
    %4 = arith.maximumf %2, %3 : vector<8x512xf32>
    %c0_4 = arith.constant 0 : index
    %c0_5 = arith.constant 0 : index
    %5 = vector.load %arg3[%c0_4, %c0_5] : memref<1x512xf32, #tpu.memory_space<vmem>>, vector<1x512xf32>
    %6 = vector.broadcast %5 : vector<1x512xf32> to vector<8x512xf32>
    %7 = arith.mulf %4, %6 : vector<8x512xf32>
    %cst_6 = arith.constant dense<0.000000e+00> : vector<8xf32>
    %8 = vector.multi_reduction <add>, %7, %cst_6 [1] : vector<8x512xf32> to vector<8xf32>
    %9 = vector.shape_cast %8 : vector<8xf32> to vector<8x1xf32>
    %c0_7 = arith.constant 0 : index
    %c0_8 = arith.constant 0 : index
    %10 = vector.load %arg4[%c0_7, %c0_8] : memref<8x1xf32, #tpu.memory_space<vmem>>, vector<8x1xf32>
    tpu.vector_store %arg4[%c0_7, %c0_8], %9 {strides = array<i32>} : memref<8x1xf32, #tpu.memory_space<vmem>>, vector<8x1xf32>,
    return
  }
  func.func @transform_0(%arg0: i32) -> (i32, i32) {
    %c0_i32 = arith.constant 0 : i32
    %c0_i32_0 = arith.constant 0 : i32
    return %arg0, %c0_i32 : i32, i32
  }
  func.func @transform_1(%arg0: i32) -> (i32, i32) {
    %c0_i32 = arith.constant 0 : i32
    %c0_i32_0 = arith.constant 0 : i32
    %c0_i32_1 = arith.constant 0 : i32
    return %c0_i32, %c0_i32_0 : i32, i32
  }
  func.func @transform_2(%arg0: i32) -> (i32, i32) {
    %c0_i32 = arith.constant 0 : i32
    %c0_i32_0 = arith.constant 0 : i32
    %c0_i32_1 = arith.constant 0 : i32
    return %c0_i32, %c0_i32_0 : i32, i32
  }
  func.func @transform_3(%arg0: i32) -> (i32, i32) {
    %c0_i32 = arith.constant 0 : i32
    %c0_i32_0 = arith.constant 0 : i32
    return %arg0, %c0_i32 : i32, i32
  }
}

</mosaic_0001>

<bundles_post_ra>
// kernel: tpu_custom_call.1
= control target key start
LH: loop header
LB: loop body
LE: loop exit
PB: predicated region body
PF: predicated region fallthrough
CT: control target
= control target key end

     0   :  { %8 = vsyncpa [#allocation3], 0  ;;  %s363_s0 = inlined_call_operand.hbm [shape: f32[8,16], index: 0, kind: input, shape index: {}]   ;;  %s364_s1 = inlined_call_operand.hbm [shape: f32[16,512], index: 1, kind: input, shape index: {}]   ;;  %s365_s2 = inlined_call_operand.vmem [shape: f32[1,512], index: 2, kind: input, shape index: {}]   ;;  %s366_s3 = inlined_call_operand.vmem [shape: f32[8,1], index: 3, kind: output, shape index: {}]  }
   0x1   :  { %9 = vsyncpa [#allocation5], 0  ;;  %s301_s12 = smov [#allocation2]   ;;  %s302_s14 = smov [#allocation4]  }
   0x2   :  { %s16_s13 = sshll.u32 %s301_s12, 4  ;;  %s25_s15 = sshll.u32 %s302_s14, 4  ;;  %s17_s13 = int_to_ptr.vmem [resolvable:$true] %s16_s13  ;;  %s326_s15 = int_to_ptr.vmem [resolvable:$true] %s25_s15 }
   0x3   :  { %s253_s18 = scalar_lea.hbm %s363_s0, 128 }
   0x4   :  { %p254_p0 = scmp.ne.s32.totalorder %s363_s0, %s253_s18  ;;  %p257_p1 = scmp.lt.u32.totalorder %s253_s18, %s363_s0 }
   0x6   :  { %p259_p2 = pnand %p257_p1, %p254_p0 }
   0x8   :  { %262 = shalt.err (!%p259_p2)
}
   0x9   :  { %s263_s23 = scalar_lea.vmem %s17_s13, 128  ;;  %p268_p4 = scmp.lt.s32.totalorder %s17_s13, %s17_s13 }
   0xa   :  { %p264_p3 = scmp.ne.s32.totalorder %s17_s13, %s263_s23  ;;  %p269_p5 = scmp.lt.s32.totalorder %s263_s23, %s263_s23 }
   0xc   :  { %p270_p6 = por %p269_p5, %p268_p4 }
   0xe   :  { %p271_p7 = pnand %p270_p6, %p264_p3 }
  0x10   :  { %274 = shalt.err (!%p271_p7)
}
  0x11   :  { %19 = dma.hbm_to_vmem [thread:$0]  %s363_s0, 128, %s17_s13, [#allocation3]  }
  0x12   :  { %s275_s28 = scalar_lea.hbm %s364_s1, 1024 }
  0x13   :  { %p276_p8 = scmp.ne.s32.totalorder %s364_s1, %s275_s28  ;;  %p279_p9 = scmp.lt.u32.totalorder %s275_s28, %s364_s1 }
  0x15   :  { %p281_p10 = pnand %p279_p9, %p276_p8 }
  0x17   :  { %284 = shalt.err (!%p281_p10)
}
  0x18   :  { %s285_s6 = scalar_lea.vmem %s326_s15, 1024  ;;  %p290_p12 = scmp.lt.s32.totalorder %s326_s15, %s326_s15 }
  0x19   :  { %p286_p11 = scmp.ne.s32.totalorder %s326_s15, %s285_s6  ;;  %p291_p13 = scmp.lt.s32.totalorder %s285_s6, %s285_s6 }
  0x1b   :  { %p292_p0 = por %p291_p13, %p290_p12 }
  0x1d   :  { %p293_p1 = pnand %p292_p0, %p286_p11 }
  0x1f   :  { %296 = shalt.err (!%p293_p1)
}
  0x20   :  { %s303_s0 = smov 512   ;;  %s304_s7 = smov 32  }
  0x21   :  { %31 = dma.hbm_to_vmem [thread:$0]  %s364_s1, 1024, %s326_s15, [#allocation5], %s303_s0, %s303_s0, %s304_s7  }
  0x22   :  { %297 = dma.done.wait [#allocation3], 128  }
  0x23   :  { %298 = vsyncadd [#allocation3], 4294967168 }
  0x24   :  { %299 = dma.done.wait [#allocation5], 1024  }
  0x25   :  { %300 = vsyncadd [#allocation5], 4294966272  ;;  %v305_v0 = vmov 0.0   ;;  %v42_v1 = vld [vmem:[#allocation4 + $0x8] sm:$0xff]  ;;  %v41_v3 = vld [vmem:[#allocation4] sm:$0xff]  ;;  %vm49_vm0 = vcmask 130048   ;;  %v201_v14 = vlaneseq }
  0x26   :  { %117 = vmatprep.mubr.f32.mxu0 %v305_v0  ;;  %188 = vmatprep.mubr.f32.mxu1 %v305_v0  ;;  %v46_v2 = vld [vmem:[#allocation4 + $0x28] sm:$0xff]  ;;  %v45_v5 = vld [vmem:[#allocation4 + $0x20] sm:$0xff]  ;;  %v44_v6 = vld [vmem:[#allocation4 + $0x18] sm:$0xff]  ;;  %vm230_vm1 = vcmask 7168  }
  0x27   :  { %v240_v4 = vpack.c.bf16 %v46_v2, %v42_v1  ;;  %v48_v7 = vld [vmem:[#allocation4 + $0x38] sm:$0xff]  ;;  %v242_v8 = vpack.c.bf16 %v45_v5, %v41_v3  ;;  %v43_v10 = vld [vmem:[#allocation4 + $0x10] sm:$0xff]  ;;  %v202_v15 = vshrl.u32 %v201_v14, 7 }
  0x28   :  { %v244_v9 = vpack.c.bf16 %v48_v7, %v44_v6  ;;  %v47_v11 = vld [vmem:[#allocation4 + $0x30] sm:$0xff]  ;;  %v40_v13 = vld [vmem:[#allocation2] sm:$0xff] }
  0x29   :  { %241 = vmatprep.subr.bf16.mxu0 %v240_v4  ;;  %v246_v12 = vpack.c.bf16 %v47_v11, %v43_v10  ;;  %v203_v16 = vsub.s32 0, %v202_v15  ;;  %v199_v17 = vld [vmem:[%s365_s2] sm:$0xf]  ;;  %v207_v18 = vsub.s32 1, %v202_v15  ;;  %v211_v19 = vsub.s32 2, %v202_v15 }
  0x2a   :  { %243 = vmatpush1.bf16.msra.mxu0 %v242_v8  ;;  %245 = vmatprep.subr.bf16.mxu1 %v244_v9  ;;  %v215_v24 = vsub.s32 3, %v202_v15 }
  0x2b   :  { %247 = vmatpush1.bf16.msra.mxu1 %v246_v12  ;;  %v204_v20 = vrot.slane %v199_v17, %v203_v16  ;;  %v208_v22 = vrot.slane %v199_v17, %v207_v18  ;;  %v212_v23 = vrot.slane %v199_v17, %v211_v19 }
  0x2c   :  { %v216_v35 = vrot.slane %v199_v17, %v215_v24 }
  0x2d   :  { %238 = vmatmul.mubr.msk.f32.vlgmr.msra.gmra.mrb[0].mxu0 %vm49_vm0, %v40_v13 }
  0x2e   :  { %239 = vmatmul.mubr.msk.f32.vlgmr.msra.gmra.mrb[0].mxu1 %vm49_vm0, %v40_v13 }
 0x100   :  { %v119_v21 = vpop.f32.mrb[0].mxu0 }
 0x101   :  { %v195_v25 = vmax.f32 %v119_v21, 0.0  ;;  %v121_v26 = vpop.f32.mrb[1].mxu0  ;;  %v190_v27 = vpop.f32.mrb[0].mxu1 }
 0x102   :  { %v196_v28 = vmax.f32 %v121_v26, 0.0  ;;  %v197_v29 = vmax.f32 %v190_v27, 0.0  ;;  %v192_v30 = vpop.f32.mrb[1].mxu1 }
 0x103   :  { %v221_v31 = vmul.f32 %v204_v20, %v195_v25  ;;  %v198_v34 = vmax.f32 %v192_v30, 0.0 }
 0x104   :  { %v222_v32 = vmul.f32 %v208_v22, %v196_v28  ;;  %v223_v33 = vmul.f32 %v212_v23, %v197_v29 }
 0x105   :  { %v224_v37 = vmul.f32 %v216_v35, %v198_v34 }
 0x106   :  { %v225_v36 = vadd.f32 %v222_v32, %v221_v31 }
 0x108   :  { %v226_v38 = vadd.f32 %v225_v36, %v223_v33 }
 0x10a   :  { %v227_v39 = vadd.f32 %v226_v38, %v224_v37 }
 0x10c   :  { %228 = vadd.xlane.f32.xlu0 %v227_v39 }
 0x199   :  { %v229_v40 = vpop.xlane.xlu0 %228 }
 0x19a   :  { %231 = vst.msk [vmem:[%s366_s3] sm:$0xff] %vm230_vm1, %v229_v40 }
 0x19b   :  { %236 = vsyncpa [#allocation3], 1 }
 0x19c   :  { %237 = vsyncpa [#allocation5], 1 }

</bundles_post_ra>
